<compile_context>
chip_gen: v5e
topology: v5e:2x2
jax: 0.10.0
libtpu: 0.0.40
codegen_flags: <defaults>
</compile_context>

<pallas_src>
import numpy as np
import jax
import jax.numpy as jnp
from jax.experimental import pallas as pl
from jax.experimental.pallas import tpu as pltpu

F = 4          # n_start_filters
N = 2          # batch
H = 64         # time / height (conv axis)
W = 4          # width (untouched spatial axis)


# --------------------------- Pallas kernel ---------------------------
def _split_start_kernel(x_ref, w1a_ref, b1a_ref, w1b_ref, b1b_ref,
                        w2a_ref, b2a_ref, w2c_ref, b2c_ref,
                        p1b_ref, p2c_ref, out_ref):
    # x_ref   : (BT, H)            rows = fused N*W batch, lanes = time
    # w1a_ref : (H, H1A*F)         Toeplitz of conv_1a (K=25, stride 4, pad 12)
    # w1b_ref : (H, H*F)           Toeplitz of conv_1b (K=25, stride 1, pad 12)
    # w2a_ref : (H1A*F, F*HOUT)    Toeplitz of conv_2a (K=11, stride 2, pad 5)
    # w2c_ref : (H1A*F, H1A*F)     Toeplitz of conv_2c (K=25, stride 1, pad 12)
    # p1b_ref : (H*F, F*HOUT)      avg-pool matrix    (K=41, stride 8, pad 20)
    # p2c_ref : (H1A*F, F*HOUT)    avg-pool matrix    (K=11, stride 2, pad 5)
    # b*_ref  : (1, cols)          bias rows in matching column order
    # out_ref : (BT, 3*F*HOUT)     columns = (path*F + f)*HOUT + t
    def mm(a, b_):
        return jnp.dot(a, b_, preferred_element_type=jnp.float32)

    def safe_log(v):
        return jnp.log(jnp.maximum(v, 1e-6))

    x = x_ref[...]                                             # (BT, H)

    # first-level convs (single matmul each, zero-padding implicit in Toeplitz)
    out1a = mm(x, w1a_ref[...]) + b1a_ref[...]                 # (BT, H1A*F)
    sq1b = jnp.square(mm(x, w1b_ref[...]) + b1b_ref[...])      # (BT, H*F)

    # second-level convs on the conv_1a output
    out_a = mm(out1a, w2a_ref[...]) + b2a_ref[...]             # (BT, F*HOUT)
    sq2c = jnp.square(mm(out1a, w2c_ref[...]) + b2c_ref[...])  # (BT, H1A*F)

    # average pools (count_include_pad=True) + safe_log
    out_b = safe_log(mm(sq1b, p1b_ref[...]))                   # (BT, F*HOUT)
    out_c = safe_log(mm(sq2c, p2c_ref[...]))                   # (BT, F*HOUT)

    # single lane-dense store of the concatenated result
    out_ref[...] = jnp.concatenate([out_a, out_b, out_c], axis=1)


# --------------------- wrapper-side weight transforms ---------------------
def _conv_toeplitz(w, t_in, stride, pad, out_ft):
    """w: (K, Fi, Fo). Returns ((t_in*Fi, t_out*Fo) matrix, t_out) so that
    x_flat (cols t*Fi+fi) @ M == 1-D conv along t (cross-correlation, zero pad).
    Output columns are t*Fo+fo (out_ft=False) or fo*t_out+t (out_ft=True)."""
    K, Fi, Fo = w.shape
    t_out = (t_in + 2 * pad - K) // stride + 1
    k = np.arange(t_in)[:, None] - (stride * np.arange(t_out)[None, :] - pad)
    valid = ((k >= 0) & (k < K)).astype(np.float32)            # (t_in, t_out)
    g = w[np.clip(k, 0, K - 1)] * valid[:, :, None, None]      # (t_in, t_out, Fi, Fo)
    if out_ft:
        g = jnp.transpose(g, (0, 2, 3, 1))                     # (t_in, Fi, Fo, t_out)
    else:
        g = jnp.transpose(g, (0, 2, 1, 3))                     # (t_in, Fi, t_out, Fo)
    return g.reshape(t_in * Fi, t_out * Fo), t_out


def _avgpool_matrix(t_in, f, K, stride, pad, out_ft):
    """Constant (t_in*f, t_out*f) matrix: x_flat (cols t*f+c) @ M == AvgPool
    (count_include_pad=True). Output cols c*t_out+t (out_ft) or t*f+c."""
    t_out = (t_in + 2 * pad - K) // stride + 1
    k = np.arange(t_in)[:, None] - (stride * np.arange(t_out)[None, :] - pad)
    win = ((k >= 0) & (k < K)).astype(np.float32) / float(K)   # (t_in, t_out)
    eye = np.eye(f, dtype=np.float32)
    if out_ft:
        m = win[:, None, None, :] * eye[None, :, :, None]      # (t_in, f, f, t_out)
    else:
        m = win[:, None, :, None] * eye[None, :, None, :]      # (t_in, f, t_out, f)
    return np.asarray(m.reshape(t_in * f, t_out * f), np.float32), t_out


@jax.jit
def split_start_block(x, w1a, b1a, w1b, b1b, w2a, b2a, w2c, b2c):
    """x: (N, 1, H, W) NCHW float32. Returns (N, 3F, HOUT, W) like the PyTorch module."""
    n, cin, h, w = x.shape
    assert cin == 1
    f = w1a.shape[1]
    B = n * w

    # weight -> Toeplitz-matrix transforms (tiny, weight-only; in a real model
    # these could be precomputed once per weight update)
    w1a_t, h1a = _conv_toeplitz(w1a.reshape(25, 1, f), h, 4, 12, out_ft=False)
    w1b_t, h1b = _conv_toeplitz(w1b.reshape(25, 1, f), h, 1, 12, out_ft=False)
    w2a_t, hout = _conv_toeplitz(w2a, h1a, 2, 5, out_ft=True)
    w2c_t, h2c = _conv_toeplitz(w2c, h1a, 1, 12, out_ft=False)
    p1b, hout_b = _avgpool_matrix(h1b, f, 41, 8, 20, out_ft=True)
    p2c, hout_c = _avgpool_matrix(h2c, f, 11, 2, 5, out_ft=True)
    assert hout == hout_b == hout_c  # all three paths share the output height

    # bias rows matching each matmul's output column ordering
    b1a_r = jnp.tile(b1a, h1a).reshape(1, h1a * f)       # cols t*F+f
    b1b_r = jnp.tile(b1b, h1b).reshape(1, h1b * f)       # cols t*F+f
    b2a_r = jnp.repeat(b2a, hout).reshape(1, f * hout)   # cols f*HOUT+t
    b2c_r = jnp.tile(b2c, h2c).reshape(1, h2c * f)       # cols t*F+f

    # (N,1,H,W) -> (B=N*W, H): rows b = n*W + w, lanes = time
    xk = jnp.transpose(x[:, 0], (0, 2, 1)).reshape(B, h)

    BT = B if B <= 128 else 128                          # rows per grid step
    grid = (pl.cdiv(B, BT),)
    full = lambda a: pl.BlockSpec(a.shape, lambda i: (0, 0))
    consts = (w1a_t, b1a_r, w1b_t, b1b_r, w2a_t, b2a_r, w2c_t, b2c_r, p1b, p2c)

    out = pl.pallas_call(
        _split_start_kernel,
        out_shape=jax.ShapeDtypeStruct((B, 3 * f * hout), jnp.float32),
        grid=grid,
        in_specs=[pl.BlockSpec((BT, h), lambda i: (i, 0))] + [full(a) for a in consts],
        out_specs=pl.BlockSpec((BT, 3 * f * hout), lambda i: (i, 0)),
        compiler_params=pltpu.CompilerParams(dimension_semantics=("parallel",)),
    )(xk, *consts)

    # (B, 3F*HOUT) with cols = c*HOUT + t  ->  (N, 3F, HOUT, W)
    out = out.reshape(n, w, 3 * f, hout)
    return jnp.transpose(out, (0, 2, 3, 1))


# ---------------- pure-JAX reference (mirrors the PyTorch forward) ----------------
def _conv2d_ref(v, w_oihw, b, stride_h, pad_h):
    out = jax.lax.conv_general_dilated(
        v, w_oihw, window_strides=(stride_h, 1),
        padding=((pad_h, pad_h), (0, 0)),
        dimension_numbers=("NCHW", "OIHW", "NCHW"),
        precision=jax.lax.Precision.HIGHEST)
    return out + b[None, :, None, None]


def _avgpool_ref(v, k, s, p):
    summed = jax.lax.reduce_window(
        v, 0.0, jax.lax.add, (1, 1, k, 1), (1, 1, s, 1),
        ((0, 0), (0, 0), (p, p), (0, 0)))
    return summed / float(k)


def _safe_log_ref(v):
    return jnp.log(jnp.maximum(v, 1e-6))


def reference_forward(x, w1a, b1a, w1b, b1b, w2a, b2a, w2c, b2c):
    f = w1a.shape[1]
    w1a_o = w1a.T.reshape(f, 1, 25, 1)
    w1b_o = w1b.T.reshape(f, 1, 25, 1)
    w2a_o = jnp.transpose(w2a, (2, 1, 0))[..., None]
    w2c_o = jnp.transpose(w2c, (2, 1, 0))[..., None]
    out1a = _conv2d_ref(x, w1a_o, b1a, 4, 12)
    out_a = _conv2d_ref(out1a, w2a_o, b2a, 2, 5)
    out_b = _safe_log_ref(_avgpool_ref(jnp.square(_conv2d_ref(x, w1b_o, b1b, 1, 12)), 41, 8, 20))
    out_c = _safe_log_ref(_avgpool_ref(jnp.square(_conv2d_ref(out1a, w2c_o, b2c, 1, 12)), 11, 2, 5))
    return jnp.concatenate([out_a, out_b, out_c], axis=1)


if __name__ == "__main__":
    key = jax.random.PRNGKey(0)
    ks = jax.random.split(key, 9)
    w1a = 0.2 * jax.random.normal(ks[0], (25, F), jnp.float32)
    b1a = 0.1 * jax.random.normal(ks[1], (F,), jnp.float32)
    w1b = 0.2 * jax.random.normal(ks[2], (25, F), jnp.float32)
    b1b = 0.1 * jax.random.normal(ks[3], (F,), jnp.float32)
    w2a = 0.2 * jax.random.normal(ks[4], (11, F, F), jnp.float32)
    b2a = 0.1 * jax.random.normal(ks[5], (F,), jnp.float32)
    w2c = 0.2 * jax.random.normal(ks[6], (25, F, F), jnp.float32)
    b2c = 0.1 * jax.random.normal(ks[7], (F,), jnp.float32)
    x = jax.random.normal(ks[8], (N, 1, H, W), jnp.float32)

    out = split_start_block(x, w1a, b1a, w1b, b1b, w2a, b2a, w2c, b2c)
    out = jax.block_until_ready(out)

    ref = reference_forward(x, w1a, b1a, w1b, b1b, w2a, b2a, w2c, b2c)
    assert out.shape == ref.shape, (out.shape, ref.shape)
    max_err = float(jnp.max(jnp.abs(out - ref)))
    assert max_err < 1e-2, f"max abs error {max_err}"

    print("KERNEL_OK")
</pallas_src>

<mosaic_0001>
module attributes {stable_mosaic.version = 11 : i64} {
  func.func @_split_start_kernel(%arg0: i32, %arg1: memref<8x64xf32, #tpu.memory_space<vmem>>, %arg2: memref<64x64xf32, #tpu.memory_space<vmem>>, %arg3: memref<1x64xf32, #tpu.memory_space<vmem>>, %arg4: memref<64x256xf32, #tpu.memory_space<vmem>>, %arg5: memref<1x256xf32, #tpu.memory_space<vmem>>, %arg6: memref<64x32xf32, #tpu.memory_space<vmem>>, %arg7: memref<1x32xf32, #tpu.memory_space<vmem>>, %arg8: memref<64x64xf32, #tpu.memory_space<vmem>>, %arg9: memref<1x64xf32, #tpu.memory_space<vmem>>, %arg10: memref<256x32xf32, #tpu.memory_space<vmem>>, %arg11: memref<64x32xf32, #tpu.memory_space<vmem>>, %arg12: memref<8x96xf32, #tpu.memory_space<vmem>>) attributes {dimension_semantics = [#tpu.dimension_semantics<parallel>], iteration_bounds = array<i64: 1>, scalar_prefetch = 0 : i64, scratch_operands = 0 : i64, tpu.core_type = #tpu.core_type<tc>, window_params = [{transform_indices = @transform_0, window_bounds = array<i64: 8, 64>}, {pipeline_mode = #tpu.pipeline_mode<synchronous>, transform_indices = @transform_1, window_bounds = array<i64: 64, 64>}, {pipeline_mode = #tpu.pipeline_mode<synchronous>, transform_indices = @transform_2, window_bounds = array<i64: 1, 64>}, {pipeline_mode = #tpu.pipeline_mode<synchronous>, transform_indices = @transform_3, window_bounds = array<i64: 64, 256>}, {pipeline_mode = #tpu.pipeline_mode<synchronous>, transform_indices = @transform_4, window_bounds = array<i64: 1, 256>}, {pipeline_mode = #tpu.pipeline_mode<synchronous>, transform_indices = @transform_5, window_bounds = array<i64: 64, 32>}, {pipeline_mode = #tpu.pipeline_mode<synchronous>, transform_indices = @transform_6, window_bounds = array<i64: 1, 32>}, {pipeline_mode = #tpu.pipeline_mode<synchronous>, transform_indices = @transform_7, window_bounds = array<i64: 64, 64>}, {pipeline_mode = #tpu.pipeline_mode<synchronous>, transform_indices = @transform_8, window_bounds = array<i64: 1, 64>}, {pipeline_mode = #tpu.pipeline_mode<synchronous>, transform_indices = @transform_9, window_bounds = array<i64: 256, 32>}, {pipeline_mode = #tpu.pipeline_mode<synchronous>, transform_indices = @transform_10, window_bounds = array<i64: 64, 32>}, {transform_indices = @transform_11, window_bounds = array<i64: 8, 96>}]} {
    %c0 = arith.constant 0 : index
    %c0_0 = arith.constant 0 : index
    %0 = vector.load %arg1[%c0, %c0_0] : memref<8x64xf32, #tpu.memory_space<vmem>>, vector<8x64xf32>
    %c0_1 = arith.constant 0 : index
    %c0_2 = arith.constant 0 : index
    %1 = vector.load %arg2[%c0_1, %c0_2] : memref<64x64xf32, #tpu.memory_space<vmem>>, vector<64x64xf32>
    %cst = arith.constant dense<0.000000e+00> : vector<8x64xf32>
    %2 = tpu.matmul %0, %1, %cst {dimension_numbers = #tpu.dot_dimension_numbers<[1], [0], [0], [1], [0, 0, 1, 1], [], []>} : vector<8x64xf32>, vector<64x64xf32>, vector<8x64xf32> -> vector<8x64xf32>
    %c0_3 = arith.constant 0 : index
    %c0_4 = arith.constant 0 : index
    %3 = vector.load %arg3[%c0_3, %c0_4] : memref<1x64xf32, #tpu.memory_space<vmem>>, vector<1x64xf32>
    %4 = vector.broadcast %3 : vector<1x64xf32> to vector<8x64xf32>
    %5 = arith.addf %2, %4 : vector<8x64xf32>
    %c0_5 = arith.constant 0 : index
    %c0_6 = arith.constant 0 : index
    %6 = vector.load %arg4[%c0_5, %c0_6] : memref<64x256xf32, #tpu.memory_space<vmem>>, vector<64x256xf32>
    %cst_7 = arith.constant dense<0.000000e+00> : vector<8x256xf32>
    %7 = tpu.matmul %0, %6, %cst_7 {dimension_numbers = #tpu.dot_dimension_numbers<[1], [0], [0], [1], [0, 0, 1, 1], [], []>} : vector<8x64xf32>, vector<64x256xf32>, vector<8x256xf32> -> vector<8x256xf32>
    %c0_8 = arith.constant 0 : index
    %c0_9 = arith.constant 0 : index
    %8 = vector.load %arg5[%c0_8, %c0_9] : memref<1x256xf32, #tpu.memory_space<vmem>>, vector<1x256xf32>
    %9 = vector.broadcast %8 : vector<1x256xf32> to vector<8x256xf32>
    %10 = arith.addf %7, %9 : vector<8x256xf32>
    %11 = arith.mulf %10, %10 : vector<8x256xf32>
    %c0_10 = arith.constant 0 : index
    %c0_11 = arith.constant 0 : index
    %12 = vector.load %arg6[%c0_10, %c0_11] : memref<64x32xf32, #tpu.memory_space<vmem>>, vector<64x32xf32>
    %cst_12 = arith.constant dense<0.000000e+00> : vector<8x32xf32>
    %13 = tpu.matmul %5, %12, %cst_12 {dimension_numbers = #tpu.dot_dimension_numbers<[1], [0], [0], [1], [0, 0, 1, 1], [], []>} : vector<8x64xf32>, vector<64x32xf32>, vector<8x32xf32> -> vector<8x32xf32>
    %c0_13 = arith.constant 0 : index
    %c0_14 = arith.constant 0 : index
    %14 = vector.load %arg7[%c0_13, %c0_14] : memref<1x32xf32, #tpu.memory_space<vmem>>, vector<1x32xf32>
    %15 = vector.broadcast %14 : vector<1x32xf32> to vector<8x32xf32>
    %16 = arith.addf %13, %15 : vector<8x32xf32>
    %c0_15 = arith.constant 0 : index
    %c0_16 = arith.constant 0 : index
    %17 = vector.load %arg8[%c0_15, %c0_16] : memref<64x64xf32, #tpu.memory_space<vmem>>, vector<64x64xf32>
    %cst_17 = arith.constant dense<0.000000e+00> : vector<8x64xf32>
    %18 = tpu.matmul %5, %17, %cst_17 {dimension_numbers = #tpu.dot_dimension_numbers<[1], [0], [0], [1], [0, 0, 1, 1], [], []>} : vector<8x64xf32>, vector<64x64xf32>, vector<8x64xf32> -> vector<8x64xf32>
    %c0_18 = arith.constant 0 : index
    %c0_19 = arith.constant 0 : index
    %19 = vector.load %arg9[%c0_18, %c0_19] : memref<1x64xf32, #tpu.memory_space<vmem>>, vector<1x64xf32>
    %20 = vector.broadcast %19 : vector<1x64xf32> to vector<8x64xf32>
    %21 = arith.addf %18, %20 : vector<8x64xf32>
    %22 = arith.mulf %21, %21 : vector<8x64xf32>
    %c0_20 = arith.constant 0 : index
    %c0_21 = arith.constant 0 : index
    %23 = vector.load %arg10[%c0_20, %c0_21] : memref<256x32xf32, #tpu.memory_space<vmem>>, vector<256x32xf32>
    %cst_22 = arith.constant dense<0.000000e+00> : vector<8x32xf32>
    %24 = tpu.matmul %11, %23, %cst_22 {dimension_numbers = #tpu.dot_dimension_numbers<[1], [0], [0], [1], [0, 0, 1, 1], [], []>} : vector<8x256xf32>, vector<256x32xf32>, vector<8x32xf32> -> vector<8x32xf32>
    %cst_23 = arith.constant 9.99999997E-7 : f32
    %25 = vector.broadcast %cst_23 : f32 to vector<8x32xf32>
    %26 = arith.maximumf %24, %25 : vector<8x32xf32>
    %27 = math.log %26 : vector<8x32xf32>
    %c0_24 = arith.constant 0 : index
    %c0_25 = arith.constant 0 : index
    %28 = vector.load %arg11[%c0_24, %c0_25] : memref<64x32xf32, #tpu.memory_space<vmem>>, vector<64x32xf32>
    %cst_26 = arith.constant dense<0.000000e+00> : vector<8x32xf32>
    %29 = tpu.matmul %22, %28, %cst_26 {dimension_numbers = #tpu.dot_dimension_numbers<[1], [0], [0], [1], [0, 0, 1, 1], [], []>} : vector<8x64xf32>, vector<64x32xf32>, vector<8x32xf32> -> vector<8x32xf32>
    %cst_27 = arith.constant 9.99999997E-7 : f32
    %30 = vector.broadcast %cst_27 : f32 to vector<8x32xf32>
    %31 = arith.maximumf %29, %30 : vector<8x32xf32>
    %32 = math.log %31 : vector<8x32xf32>
    %33 = tpu.concatenate %16, %27, %32 in 1 : vector<8x32xf32>, vector<8x32xf32>, vector<8x32xf32> -> vector<8x96xf32>
    %c0_28 = arith.constant 0 : index
    %c0_29 = arith.constant 0 : index
    %34 = vector.load %arg12[%c0_28, %c0_29] : memref<8x96xf32, #tpu.memory_space<vmem>>, vector<8x96xf32>
    tpu.vector_store %arg12[%c0_28, %c0_29], %33 {strides = array<i32>} : memref<8x96xf32, #tpu.memory_space<vmem>>, vector<8x96xf32>,
    return
  }
  func.func @transform_0(%arg0: i32) -> (i32, i32) {
    %c0_i32 = arith.constant 0 : i32
    %c0_i32_0 = arith.constant 0 : i32
    return %arg0, %c0_i32 : i32, i32
  }
  func.func @transform_1(%arg0: i32) -> (i32, i32) {
    %c0_i32 = arith.constant 0 : i32
    %c0_i32_0 = arith.constant 0 : i32
    %c0_i32_1 = arith.constant 0 : i32
    return %c0_i32, %c0_i32_0 : i32, i32
  }
  func.func @transform_2(%arg0: i32) -> (i32, i32) {
    %c0_i32 = arith.constant 0 : i32
    %c0_i32_0 = arith.constant 0 : i32
    %c0_i32_1 = arith.constant 0 : i32
    return %c0_i32, %c0_i32_0 : i32, i32
  }
  func.func @transform_3(%arg0: i32) -> (i32, i32) {
    %c0_i32 = arith.constant 0 : i32
    %c0_i32_0 = arith.constant 0 : i32
    %c0_i32_1 = arith.constant 0 : i32
    return %c0_i32, %c0_i32_0 : i32, i32
  }
  func.func @transform_4(%arg0: i32) -> (i32, i32) {
    %c0_i32 = arith.constant 0 : i32
    %c0_i32_0 = arith.constant 0 : i32
    %c0_i32_1 = arith.constant 0 : i32
    return %c0_i32, %c0_i32_0 : i32, i32
  }
  func.func @transform_5(%arg0: i32) -> (i32, i32) {
    %c0_i32 = arith.constant 0 : i32
    %c0_i32_0 = arith.constant 0 : i32
    %c0_i32_1 = arith.constant 0 : i32
    return %c0_i32, %c0_i32_0 : i32, i32
  }
  func.func @transform_6(%arg0: i32) -> (i32, i32) {
    %c0_i32 = arith.constant 0 : i32
    %c0_i32_0 = arith.constant 0 : i32
    %c0_i32_1 = arith.constant 0 : i32
    return %c0_i32, %c0_i32_0 : i32, i32
  }
  func.func @transform_7(%arg0: i32) -> (i32, i32) {
    %c0_i32 = arith.constant 0 : i32
    %c0_i32_0 = arith.constant 0 : i32
    %c0_i32_1 = arith.constant 0 : i32
    return %c0_i32, %c0_i32_0 : i32, i32
  }
  func.func @transform_8(%arg0: i32) -> (i32, i32) {
    %c0_i32 = arith.constant 0 : i32
    %c0_i32_0 = arith.constant 0 : i32
    %c0_i32_1 = arith.constant 0 : i32
    return %c0_i32, %c0_i32_0 : i32, i32
  }
  func.func @transform_9(%arg0: i32) -> (i32, i32) {
    %c0_i32 = arith.constant 0 : i32
    %c0_i32_0 = arith.constant 0 : i32
    %c0_i32_1 = arith.constant 0 : i32
    return %c0_i32, %c0_i32_0 : i32, i32
  }
  func.func @transform_10(%arg0: i32) -> (i32, i32) {
    %c0_i32 = arith.constant 0 : i32
    %c0_i32_0 = arith.constant 0 : i32
    %c0_i32_1 = arith.constant 0 : i32
    return %c0_i32, %c0_i32_0 : i32, i32
  }
  func.func @transform_11(%arg0: i32) -> (i32, i32) {
    %c0_i32 = arith.constant 0 : i32
    %c0_i32_0 = arith.constant 0 : i32
    return %arg0, %c0_i32 : i32, i32
  }
}

</mosaic_0001>

<bundles_post_ra>
// kernel: tile.23
= control target key start
LH: loop header
LB: loop body
LE: loop exit
PB: predicated region body
PF: predicated region fallthrough
CT: control target
= control target key end

     0   :  { %s64_s0 = inlined_call_operand.vmem [shape: f32[4], index: 0, kind: input, shape index: {}]   ;;  %s65_s1 = inlined_call_operand.vmem [shape: f32[64,4], index: 1, kind: output, shape index: {}]  }
   0x1   :  { %v4_v0 = vld [vmem:[%s64_s0] ss:$0 sm:$0xff] }
   0x2   :  { %5 = vst [vmem:[%s65_s1] sm:$0xff] %v4_v0 }
   0x3   :  { %20 = vst [vmem:[%s65_s1 + $0x8] sm:$0xff] %v4_v0 }
   0x4   :  { %21 = vst [vmem:[%s65_s1 + $0x10] sm:$0xff] %v4_v0 }
   0x5   :  { %22 = vst [vmem:[%s65_s1 + $0x18] sm:$0xff] %v4_v0 }
   0x6   :  { %23 = vst [vmem:[%s65_s1 + $0x20] sm:$0xff] %v4_v0 }
   0x7   :  { %24 = vst [vmem:[%s65_s1 + $0x28] sm:$0xff] %v4_v0 }
   0x8   :  { %25 = vst [vmem:[%s65_s1 + $0x30] sm:$0xff] %v4_v0 }
   0x9   :  { %26 = vst [vmem:[%s65_s1 + $0x38] sm:$0xff] %v4_v0 }

// kernel: tile.24
= control target key start
LH: loop header
LB: loop body
LE: loop exit
PB: predicated region body
PF: predicated region fallthrough
CT: control target
= control target key end

     0   :  { %vm5_vm0 = vcmask 1041409   ;;  %s426_s14 = smov 124   ;;  %s427_s15 = smov 116   ;;  %vm7_vm1 = vcmask 31744   ;;  %vm17_vm2 = vcmask 1048544   ;;  %vm27_vm3 = vcmask 1015744   ;;  %s697_s0 = inlined_call_operand.vmem [shape: f32[64,4], index: 0, kind: input, shape index: {}]   ;;  %s698_s1 = inlined_call_operand.vmem [shape: f32[1,256], index: 1, kind: output, shape index: {}]  }
   0x1   :  { %v332_v0 = vld [vmem:[%s697_s0 + $0x1f] sm:$0x1]   ;;  %v336_v3 = vld [vmem:[%s697_s0 + $0x1d] sm:$0x1]   ;;  %v334_v6 = vld [vmem:[%s697_s0 + $0x1e] sm:$0x1]  }
   0x2   :  { %v333_v1 = vld [vmem:[%s697_s0 + $0x3e] sm:$0x2]   ;;  %v337_v4 = vld [vmem:[%s697_s0 + $0x3c] sm:$0x2]   ;;  %v335_v7 = vld [vmem:[%s697_s0 + $0x3d] sm:$0x2]  }
   0x3   :  { %v14_v2 = vsel %vm5_vm0, %v333_v1, %v332_v0  ;;  %v34_v5 = vsel %vm5_vm0, %v337_v4, %v336_v3  ;;  %v338_v8 = vld [vmem:[%s697_s0 + $0x1c] sm:$0x1]   ;;  %v24_v10 = vsel %vm5_vm0, %v335_v7, %v334_v6  ;;  %v340_v11 = vld [vmem:[%s697_s0 + $0x1b] sm:$0x1]   ;;  %s428_s28 = smov 108   ;;  %s429_s29 = smov 120  }
   0x4   :  { %15 = vrot.lane.b32.xlu0 %v14_v2, %s426_s14  ;;  %35 = vrot.lane.b32.xlu1 %v34_v5, %s427_s15  ;;  %v339_v9 = vld [vmem:[%s697_s0 + $0x3b] sm:$0x2]   ;;  %v341_v12 = vld [vmem:[%s697_s0 + $0x3a] sm:$0x2]   ;;  %s430_s30 = smov 112   ;;  %s431_s14 = smov 104  }
   0x5   :  { %v44_v13 = vsel %vm5_vm0, %v339_v9, %v338_v8  ;;  %v54_v14 = vsel %vm5_vm0, %v341_v12, %v340_v11  ;;  %v342_v15 = vld [vmem:[%s697_s0 + $0x1a] sm:$0x1]   ;;  %v344_v17 = vld [vmem:[%s697_s0 + $0x19] sm:$0x1]   ;;  %v346_v19 = vld [vmem:[%s697_s0 + $0x18] sm:$0x1]  }
   0x6   :  { %55 = vrot.lane.b32.xlu2 %v54_v14, %s428_s28  ;;  %v343_v16 = vld [vmem:[%s697_s0 + $0x39] sm:$0x2]   ;;  %v345_v18 = vld [vmem:[%s697_s0 + $0x38] sm:$0x2]   ;;  %v347_v20 = vld [vmem:[%s697_s0 + $0x37] sm:$0x2]  }
   0x7   :  { %v64_v21 = vsel %vm5_vm0, %v343_v16, %v342_v15  ;;  %v74_v22 = vsel %vm5_vm0, %v345_v18, %v344_v17  ;;  %v84_v23 = vsel %vm5_vm0, %v347_v20, %v346_v19  ;;  %s432_s15 = smov 100   ;;  %s433_s16 = smov 96   ;;  %v348_v24 = vld [vmem:[%s697_s0 + $0x17] sm:$0x1]   ;;  %v350_v26 = vld [vmem:[%s697_s0 + $0x16] sm:$0x1]  }
   0x8   :  { %v349_v25 = vld [vmem:[%s697_s0 + $0x36] sm:$0x2]   ;;  %v351_v27 = vld [vmem:[%s697_s0 + $0x35] sm:$0x2]   ;;  %v352_v28 = vld [vmem:[%s697_s0 + $0x15] sm:$0x1]  }
   0x9   :  { %v353_v29 = vld [vmem:[%s697_s0 + $0x34] sm:$0x2]   ;;  %v94_v30 = vsel %vm5_vm0, %v349_v25, %v348_v24  ;;  %v104_v31 = vsel %vm5_vm0, %v351_v27, %v350_v26  ;;  %s436_s2 = smov 84   ;;  %v354_v33 = vld [vmem:[%s697_s0 + $0x14] sm:$0x1]   ;;  %s439_s17 = smov 72  }
   0xa   :  { %v114_v32 = vsel %vm5_vm0, %v353_v29, %v352_v28  ;;  %v355_v34 = vld [vmem:[%s697_s0 + $0x33] sm:$0x2]   ;;  %v356_v35 = vld [vmem:[%s697_s0 + $0x13] sm:$0x1]   ;;  %v358_v37 = vld [vmem:[%s697_s0 + $0x12] sm:$0x1]  }
   0xb   :  { %v357_v36 = vld [vmem:[%s697_s0 + $0x32] sm:$0x2]   ;;  %v359_v38 = vld [vmem:[%s697_s0 + $0x31] sm:$0x2]   ;;  %v124_v39 = vsel %vm5_vm0, %v355_v34, %v354_v33  ;;  %v360_v42 = vld [vmem:[%s697_s0 + $0x11] sm:$0x1]  }
   0xc   :  { %25 = vrot.lane.b32.xlu0 %v24_v10, %s429_s29  ;;  %45 = vrot.lane.b32.xlu1 %v44_v13, %s430_s30  ;;  %s434_s29 = smov 92   ;;  %s435_s30 = smov 88   ;;  %v134_v40 = vsel %vm5_vm0, %v357_v36, %v356_v35  ;;  %v144_v41 = vsel %vm5_vm0, %v359_v38, %v358_v37  ;;  %v361_v43 = vld [vmem:[%s697_s0 + $0x30] sm:$0x2]   ;;  %v362_v44 = vld [vmem:[%s697_s0 + $0x10] sm:$0x1]  }
   0xd   :  { %v363_v45 = vld [vmem:[%s697_s0 + $0x2f] sm:$0x2]   ;;  %v364_v46 = vld [vmem:[%s697_s0 + $0xf] sm:$0x1]   ;;  %v154_v48 = vsel %vm5_vm0, %v361_v43, %v360_v42  ;;  %s442_s3 = smov 60   ;;  %s445_s18 = smov 48  }
   0xe   :  { %65 = vrot.lane.b32.xlu2 %v64_v21, %s431_s14  ;;  %v365_v47 = vld [vmem:[%s697_s0 + $0x2e] sm:$0x2]   ;;  %v164_v49 = vsel %vm5_vm0, %v363_v45, %v362_v44  ;;  %v366_v51 = vld [vmem:[%s697_s0 + $0xe] sm:$0x1]   ;;  %v368_v53 = vld [vmem:[%s697_s0 + $0xd] sm:$0x1]  }
   0xf   :  { %v174_v50 = vsel %vm5_vm0, %v365_v47, %v364_v46  ;;  %v367_v52 = vld [vmem:[%s697_s0 + $0x2d] sm:$0x2]   ;;  %v369_v54 = vld [vmem:[%s697_s0 + $0x2c] sm:$0x2]   ;;  %v370_v55 = vld [vmem:[%s697_s0 + $0xc] sm:$0x1]  }
  0x10   :  { %v371_v56 = vld [vmem:[%s697_s0 + $0x2b] sm:$0x2]   ;;  %v184_v57 = vsel %vm5_vm0, %v367_v52, %v366_v51  ;;  %v194_v58 = vsel %vm5_vm0, %v369_v54, %v368_v53  ;;  %v372_v60 = vld [vmem:[%s697_s0 + $0xb] sm:$0x1]   ;;  %v374_v62 = vld [vmem:[%s697_s0 + $0xa] sm:$0x1]  }
  0x11   :  { %v204_v59 = vsel %vm5_vm0, %v371_v56, %v370_v55  ;;  %v373_v61 = vld [vmem:[%s697_s0 + $0x2a] sm:$0x2]   ;;  %v375_v63 = vld [vmem:[%s697_s0 + $0x29] sm:$0x2]   ;;  %v376_v0 = vld [vmem:[%s697_s0 + $0x9] sm:$0x1]  }
  0x12   :  { %v377_v1 = vld [vmem:[%s697_s0 + $0x28] sm:$0x2]   ;;  %v214_v2 = vsel %vm5_vm0, %v373_v61, %v372_v60  ;;  %v224_v3 = vsel %vm5_vm0, %v375_v63, %v374_v62  ;;  %s448_s4 = smov 36   ;;  %v378_v5 = vld [vmem:[%s697_s0 + $0x8] sm:$0x1]   ;;  %s451_s19 = smov 24  }
  0x13   :  { %v234_v4 = vsel %vm5_vm0, %v377_v1, %v376_v0  ;;  %v379_v6 = vld [vmem:[%s697_s0 + $0x27] sm:$0x2]   ;;  %v380_v7 = vld [vmem:[%s697_s0 + $0x7] sm:$0x1]   ;;  %v382_v9 = vld [vmem:[%s697_s0 + $0x6] sm:$0x1]  }
  0x14   :  { %75 = vrot.lane.b32.xlu0 %v74_v22, %s432_s15  ;;  %85 = vrot.lane.b32.xlu1 %v84_v23, %s433_s16  ;;  %s437_s15 = smov 80   ;;  %s438_s16 = smov 76   ;;  %v381_v8 = vld [vmem:[%s697_s0 + $0x26] sm:$0x2]   ;;  %v383_v10 = vld [vmem:[%s697_s0 + $0x25] sm:$0x2]   ;;  %v244_v11 = vsel %vm5_vm0, %v379_v6, %v378_v5 }
  0x15   :  { %v254_v12 = vsel %vm5_vm0, %v381_v8, %v380_v7  ;;  %v264_v13 = vsel %vm5_vm0, %v383_v10, %v382_v9  ;;  %v384_v14 = vld [vmem:[%s697_s0 + $0x5] sm:$0x1]   ;;  %v386_v16 = vld [vmem:[%s697_s0 + $0x4] sm:$0x1]   ;;  %v388_v18 = vld [vmem:[%s697_s0 + $0x3] sm:$0x1]  }
  0x16   :  { %95 = vrot.lane.b32.xlu2 %v94_v30, %s434_s29  ;;  %v385_v15 = vld [vmem:[%s697_s0 + $0x24] sm:$0x2]   ;;  %v387_v17 = vld [vmem:[%s697_s0 + $0x23] sm:$0x2]   ;;  %v389_v19 = vld [vmem:[%s697_s0 + $0x22] sm:$0x2]  }
  0x17   :  { %v274_v20 = vsel %vm5_vm0, %v385_v15, %v384_v14  ;;  %v284_v21 = vsel %vm5_vm0, %v387_v17, %v386_v16  ;;  %v294_v22 = vsel %vm5_vm0, %v389_v19, %v388_v18  ;;  %s454_s5 = smov 12   ;;  %v390_v23 = vld [vmem:[%s697_s0 + $0x2] sm:$0x1]   ;;  %v392_v25 = vld [vmem:[%s697_s0 + $0x1] sm:$0x1]   ;;  %s455_s14 = smov 8  }
  0x18   :  { %v391_v24 = vld [vmem:[%s697_s0 + $0x21] sm:$0x2]   ;;  %v393_v26 = vld [vmem:[%s697_s0 + $0x20] sm:$0x2]   ;;  %v2_v29 = vld [vmem:[%s697_s0] sm:$0x1]  }
  0x19   :  { %v304_v27 = vsel %vm5_vm0, %v391_v24, %v390_v23  ;;  %v314_v28 = vsel %vm5_vm0, %v393_v26, %v392_v25  ;;  %v331_v30 = vld [vmem:[%s697_s0 + $0x1f] sm:$0x2]   ;;  %vm37_vm4 = vcmask 982944   ;;  %vm47_vm5 = vcmask 950144  }
  0x1a   :  { %vm57_vm6 = vcmask 917344   ;;  %vm67_vm7 = vcmask 884544   ;;  %vm77_vm8 = vcmask 851744   ;;  %vm87_vm9 = vcmask 818944  }
  0x1b   :  { %vm97_vm10 = vcmask 786144   ;;  %vm107_vm11 = vcmask 753344   ;;  %vm117_vm12 = vcmask 720544   ;;  %vm127_vm13 = vcmask 687744  }
  0x1c   :  { %105 = vrot.lane.b32.xlu0 %v104_v31, %s435_s30  ;;  %115 = vrot.lane.b32.xlu1 %v114_v32, %s436_s2  ;;  %s440_s30 = smov 68   ;;  %s441_s2 = smov 64   ;;  %v6_v31 = vsel %vm5_vm0, %v331_v30, %v2_v29  ;;  %vm137_vm14 = vcmask 654944   ;;  %vm147_vm15 = vcmask 622144   ;;  %vm157_vm0 = vcmask 589344  }
  0x1d   :  { %8 = vst.msk [vmem:[#allocation0] ss:$8 sm:$0x3] %vm7_vm1, %v6_v31   ;;  %vm167_vm1 = vcmask 556544  }
  0x1e   :  { %125 = vrot.lane.b32.xlu2 %v124_v39, %s437_s15  ;;  %s456_s15 = smov 4  }
  0x24   :  { %135 = vrot.lane.b32.xlu0 %v134_v40, %s438_s16  ;;  %145 = vrot.lane.b32.xlu1 %v144_v41, %s439_s17  ;;  %s443_s16 = smov 56   ;;  %s444_s17 = smov 52  }
  0x26   :  { %155 = vrot.lane.b32.xlu2 %v154_v48, %s440_s30 }
  0x2c   :  { %165 = vrot.lane.b32.xlu0 %v164_v49, %s441_s2  ;;  %175 = vrot.lane.b32.xlu1 %v174_v50, %s442_s3  ;;  %s446_s2 = smov 44   ;;  %s447_s3 = smov 40  }
  0x2e   :  { %185 = vrot.lane.b32.xlu2 %v184_v57, %s443_s16 }
  0x34   :  { %195 = vrot.lane.b32.xlu0 %v194_v58, %s444_s17  ;;  %205 = vrot.lane.b32.xlu1 %v204_v59, %s445_s18  ;;  %s449_s17 = smov 32   ;;  %s450_s18 = smov 28  }
  0x36   :  { %215 = vrot.lane.b32.xlu2 %v214_v2, %s446_s2 }
  0x3c   :  { %225 = vrot.lane.b32.xlu0 %v224_v3, %s447_s3  ;;  %235 = vrot.lane.b32.xlu1 %v234_v4, %s448_s4  ;;  %s452_s3 = smov 20   ;;  %s453_s4 = smov 16  }
  0x3e   :  { %245 = vrot.lane.b32.xlu2 %v244_v11, %s449_s17 }
  0x44   :  { %255 = vrot.lane.b32.xlu0 %v254_v12, %s450_s18  ;;  %265 = vrot.lane.b32.xlu1 %v264_v13, %s451_s19 }
  0x46   :  { %275 = vrot.lane.b32.xlu2 %v274_v20, %s452_s3 }
  0x4c   :  { %285 = vrot.lane.b32.xlu0 %v284_v21, %s453_s4  ;;  %295 = vrot.lane.b32.xlu1 %v294_v22, %s454_s5 }
  0x4e   :  { %305 = vrot.lane.b32.xlu2 %v304_v27, %s455_s14 }
  0x54   :  { %315 = vrot.lane.b32.xlu0 %v314_v28, %s456_s15 }
  0x60   :  { %v56_v32 = vpop.permute.xlu2 %55  }
  0x68   :  { %v66_v33 = vpop.permute.xlu2 %65  }
  0x70   :  { %v96_v34 = vpop.permute.xlu2 %95  }
  0x76   :  { %v16_v35 = vpop.permute.xlu0 %15   ;;  %v36_v36 = vpop.permute.xlu1 %35  }
  0x77   :  { %18 = vst.msk [vmem:[#allocation0] ss:$8 sm:$0x3] %vm17_vm2, %v16_v35   ;;  %vm177_vm2 = vcmask 523744  }
  0x78   :  { %v126_v37 = vpop.permute.xlu2 %125  }
  0x7e   :  { %v26_v38 = vpop.permute.xlu0 %25   ;;  %v46_v39 = vpop.permute.xlu1 %45  }
  0x7f   :  { %28 = vst.msk [vmem:[#allocation0] ss:$8 sm:$0x3] %vm27_vm3, %v26_v38   ;;  %vm187_vm3 = vcmask 490944  }
  0x80   :  { %38 = vst.msk [vmem:[#allocation0] ss:$8 sm:$0x3] %vm37_vm4, %v36_v36   ;;  %v156_v40 = vpop.permute.xlu2 %155   ;;  %vm197_vm4 = vcmask 458144  }
  0x81   :  { %48 = vst.msk [vmem:[#allocation0] ss:$8 sm:$0x3] %vm47_vm5, %v46_v39   ;;  %vm207_vm5 = vcmask 425344  }
  0x82   :  { %58 = vst.msk [vmem:[#allocation0] ss:$8 sm:$0x3] %vm57_vm6, %v56_v32   ;;  %vm217_vm6 = vcmask 392544  }
  0x83   :  { %68 = vst.msk [vmem:[#allocation0] ss:$8 sm:$0x3] %vm67_vm7, %v66_v33   ;;  %vm227_vm7 = vcmask 359744  }
  0x86   :  { %v76_v41 = vpop.permute.xlu0 %75   ;;  %v86_v42 = vpop.permute.xlu1 %85  }
  0x87   :  { %78 = vst.msk [vmem:[#allocation0] ss:$8 sm:$0x3] %vm77_vm8, %v76_v41   ;;  %vm237_vm8 = vcmask 326944  }
  0x88   :  { %88 = vst.msk [vmem:[#allocation0] ss:$8 sm:$0x3] %vm87_vm9, %v86_v42   ;;  %v186_v43 = vpop.permute.xlu2 %185   ;;  %vm247_vm9 = vcmask 294144  }
  0x89   :  { %98 = vst.msk [vmem:[#allocation0] ss:$8 sm:$0x3] %vm97_vm10, %v96_v34   ;;  %vm257_vm10 = vcmask 261344  }
  0x8e   :  { %v106_v44 = vpop.permute.xlu0 %105   ;;  %v116_v45 = vpop.permute.xlu1 %115  }
  0x8f   :  { %108 = vst.msk [vmem:[#allocation0] ss:$8 sm:$0x3] %vm107_vm11, %v106_v44   ;;  %vm267_vm11 = vcmask 228544  }
  0x90   :  { %118 = vst.msk [vmem:[#allocation0] ss:$8 sm:$0x3] %vm117_vm12, %v116_v45   ;;  %v216_v46 = vpop.permute.xlu2 %215   ;;  %vm277_vm12 = vcmask 195744  }
  0x91   :  { %128 = vst.msk [vmem:[#allocation0] ss:$8 sm:$0x3] %vm127_vm13, %v126_v37   ;;  %vm287_vm13 = vcmask 162944  }
  0x96   :  { %v136_v47 = vpop.permute.xlu0 %135   ;;  %v146_v48 = vpop.permute.xlu1 %145  }
  0x97   :  { %138 = vst.msk [vmem:[#allocation0] ss:$8 sm:$0x3] %vm137_vm14, %v136_v47   ;;  %vm297_vm14 = vcmask 130144  }
  0x98   :  { %148 = vst.msk [vmem:[#allocation0] ss:$8 sm:$0x3] %vm147_vm15, %v146_v48   ;;  %v246_v49 = vpop.permute.xlu2 %245   ;;  %vm307_vm15 = vcmask 97344  }
  0x99   :  { %158 = vst.msk [vmem:[#allocation0] ss:$8 sm:$0x3] %vm157_vm0, %v156_v40   ;;  %vm317_vm0 = vcmask 64544  }
  0x9e   :  { %v166_v50 = vpop.permute.xlu0 %165   ;;  %v176_v51 = vpop.permute.xlu1 %175  }
  0x9f   :  { %168 = vst.msk [vmem:[#allocation0] ss:$8 sm:$0x3] %vm167_vm1, %v166_v50  }
  0xa0   :  { %178 = vst.msk [vmem:[#allocation0] ss:$8 sm:$0x3] %vm177_vm2, %v176_v51   ;;  %v276_v52 = vpop.permute.xlu2 %275  }
  0xa1   :  { %188 = vst.msk [vmem:[#allocation0] ss:$8 sm:$0x3] %vm187_vm3, %v186_v43  }
  0xa6   :  { %v196_v53 = vpop.permute.xlu0 %195   ;;  %v206_v54 = vpop.permute.xlu1 %205  }
  0xa7   :  { %198 = vst.msk [vmem:[#allocation0] ss:$8 sm:$0x3] %vm197_vm4, %v196_v53  }
  0xa8   :  { %208 = vst.msk [vmem:[#allocation0] ss:$8 sm:$0x3] %vm207_vm5, %v206_v54   ;;  %v306_v55 = vpop.permute.xlu2 %305  }
  0xa9   :  { %218 = vst.msk [vmem:[#allocation0] ss:$8 sm:$0x3] %vm217_vm6, %v216_v46  }
  0xae   :  { %v226_v56 = vpop.permute.xlu0 %225   ;;  %v236_v57 = vpop.permute.xlu1 %235  }
  0xaf   :  { %228 = vst.msk [vmem:[#allocation0] ss:$8 sm:$0x3] %vm227_vm7, %v226_v56  }
  0xb0   :  { %238 = vst.msk [vmem:[#allocation0] ss:$8 sm:$0x3] %vm237_vm8, %v236_v57  }
  0xb1   :  { %248 = vst.msk [vmem:[#allocation0] ss:$8 sm:$0x3] %vm247_vm9, %v246_v49  }
  0xb6   :  { %v256_v58 = vpop.permute.xlu0 %255   ;;  %v266_v59 = vpop.permute.xlu1 %265  }
  0xb7   :  { %258 = vst.msk [vmem:[#allocation0] ss:$8 sm:$0x3] %vm257_vm10, %v256_v58  }
  0xb8   :  { %268 = vst.msk [vmem:[#allocation0] ss:$8 sm:$0x3] %vm267_vm11, %v266_v59  }
  0xb9   :  { %278 = vst.msk [vmem:[#allocation0] ss:$8 sm:$0x3] %vm277_vm12, %v276_v52  }
  0xbe   :  { %v286_v60 = vpop.permute.xlu0 %285   ;;  %v296_v61 = vpop.permute.xlu1 %295  }
  0xbf   :  { %288 = vst.msk [vmem:[#allocation0] ss:$8 sm:$0x3] %vm287_vm13, %v286_v60  }
  0xc0   :  { %298 = vst.msk [vmem:[#allocation0] ss:$8 sm:$0x3] %vm297_vm14, %v296_v61  }
  0xc1   :  { %308 = vst.msk [vmem:[#allocation0] ss:$8 sm:$0x3] %vm307_vm15, %v306_v55  }
  0xc6   :  { %v316_v62 = vpop.permute.xlu0 %315  }
  0xc7   :  { %318 = vst.msk [vmem:[#allocation0] ss:$8 sm:$0x3] %vm317_vm0, %v316_v62  }
  0xce   :  { %v321_v63 = vld [vmem:[#allocation0] sm:$0x1]  ;;  %v326_v0 = vld [vmem:[#allocation0 + $0x8] sm:$0x1] }
  0xcf   :  { %324 = vst [vmem:[%s698_s1] sm:$0x1] %v321_v63 }
  0xd0   :  { %394 = vst [vmem:[%s698_s1 + $0x1] sm:$0x1] %v326_v0 }

// kernel: tile.18
= control target key start
LH: loop header
LB: loop body
LE: loop exit
PB: predicated region body
PF: predicated region fallthrough
CT: control target
= control target key end

     0   :  { %s28_s0 = inlined_call_operand.vmem [shape: f32[4], index: 0, kind: input, shape index: {}]   ;;  %s29_s1 = inlined_call_operand.vmem [shape: f32[16,4], index: 1, kind: output, shape index: {}]  }
   0x1   :  { %v4_v0 = vld [vmem:[%s28_s0] ss:$0 sm:$0xff] }
   0x2   :  { %5 = vst [vmem:[%s29_s1] sm:$0xff] %v4_v0 }
   0x3   :  { %8 = vst [vmem:[%s29_s1 + $0x8] sm:$0xff] %v4_v0 }

// kernel: tile.19
= control target key start
LH: loop header
LB: loop body
LE: loop exit
PB: predicated region body
PF: predicated region fallthrough
CT: control target
= control target key end

     0   :  { %s131_s10 = smov 60   ;;  %s132_s11 = smov 52   ;;  %vm3_vm0 = vcmask 31744   ;;  %vm9_vm1 = vcmask 523744   ;;  %vm15_vm2 = vcmask 490944   ;;  %vm21_vm3 = vcmask 458144   ;;  %s207_s0 = inlined_call_operand.vmem [shape: f32[16,4], index: 0, kind: input, shape index: {}]   ;;  %s208_s1 = inlined_call_operand.vmem [shape: f32[1,64], index: 1, kind: output, shape index: {}]  }
   0x1   :  { %v101_v0 = vld [vmem:[%s207_s0 + $0xf] sm:$0x1]   ;;  %v103_v1 = vld [vmem:[%s207_s0 + $0xd] sm:$0x1]   ;;  %v105_v2 = vld [vmem:[%s207_s0 + $0xb] sm:$0x1]  }
   0x2   :  { %7 = vrot.lane.b32.xlu0 %v101_v0, %s131_s10  ;;  %19 = vrot.lane.b32.xlu1 %v103_v1, %s132_s11  ;;  %s133_s14 = smov 44   ;;  %v102_v3 = vld [vmem:[%s207_s0 + $0xe] sm:$0x1]   ;;  %v104_v4 = vld [vmem:[%s207_s0 + $0xc] sm:$0x1]   ;;  %s134_s19 = smov 56  }
   0x3   :  { %31 = vrot.lane.b32.xlu2 %v105_v2, %s133_s14  ;;  %s135_s20 = smov 48   ;;  %v106_v5 = vld [vmem:[%s207_s0 + $0xa] sm:$0x1]   ;;  %s136_s23 = smov 40   ;;  %v107_v6 = vld [vmem:[%s207_s0 + $0x9] sm:$0x1]  }
   0x4   :  { %v108_v7 = vld [vmem:[%s207_s0 + $0x8] sm:$0x1]   ;;  %s137_s28 = smov 36   ;;  %s138_s29 = smov 32   ;;  %v109_v8 = vld [vmem:[%s207_s0 + $0x7] sm:$0x1]  }
   0x5   :  { %s139_s3 = smov 28   ;;  %v110_v9 = vld [vmem:[%s207_s0 + $0x6] sm:$0x1]   ;;  %v111_v10 = vld [vmem:[%s207_s0 + $0x5] sm:$0x1]   ;;  %s140_s8 = smov 24  }
   0x6   :  { %s141_s9 = smov 20   ;;  %v112_v11 = vld [vmem:[%s207_s0 + $0x4] sm:$0x1]   ;;  %s142_s12 = smov 16   ;;  %v113_v12 = vld [vmem:[%s207_s0 + $0x3] sm:$0x1]  }
   0x7   :  { %v114_v13 = vld [vmem:[%s207_s0 + $0x2] sm:$0x1]   ;;  %s143_s17 = smov 12   ;;  %s144_s18 = smov 8   ;;  %v115_v14 = vld [vmem:[%s207_s0 + $0x1] sm:$0x1]  }
   0x8   :  { %s145_s21 = smov 4   ;;  %v2_v15 = vld [vmem:[%s207_s0] sm:$0x1]   ;;  %vm27_vm4 = vcmask 425344   ;;  %vm33_vm5 = vcmask 392544   ;;  %vm39_vm6 = vcmask 359744  }
   0x9   :  { %4 = vst.msk [vmem:[#allocation0] sm:$0x1] %vm3_vm0, %v2_v15   ;;  %vm45_vm7 = vcmask 326944   ;;  %vm51_vm8 = vcmask 294144   ;;  %vm57_vm9 = vcmask 261344   ;;  %vm63_vm10 = vcmask 228544  }
   0xa   :  { %13 = vrot.lane.b32.xlu0 %v102_v3, %s134_s19  ;;  %25 = vrot.lane.b32.xlu1 %v104_v4, %s135_s20  ;;  %vm69_vm11 = vcmask 195744   ;;  %vm75_vm12 = vcmask 162944   ;;  %vm81_vm13 = vcmask 130144   ;;  %vm87_vm14 = vcmask 97344  }
   0xb   :  { %37 = vrot.lane.b32.xlu2 %v106_v5, %s136_s23  ;;  %vm93_vm15 = vcmask 64544  }
  0x12   :  { %43 = vrot.lane.b32.xlu0 %v107_v6, %s137_s28  ;;  %49 = vrot.lane.b32.xlu1 %v108_v7, %s138_s29 }
  0x13   :  { %55 = vrot.lane.b32.xlu2 %v109_v8, %s139_s3 }
  0x1a   :  { %61 = vrot.lane.b32.xlu0 %v110_v9, %s140_s8  ;;  %67 = vrot.lane.b32.xlu1 %v111_v10, %s141_s9 }
  0x1b   :  { %73 = vrot.lane.b32.xlu2 %v112_v11, %s142_s12 }
  0x22   :  { %79 = vrot.lane.b32.xlu0 %v113_v12, %s143_s17  ;;  %85 = vrot.lane.b32.xlu1 %v114_v13, %s144_s18 }
  0x23   :  { %91 = vrot.lane.b32.xlu2 %v115_v14, %s145_s21 }
  0x5d   :  { %v32_v16 = vpop.permute.xlu2 %31  }
  0x65   :  { %v38_v17 = vpop.permute.xlu2 %37  }
  0x6d   :  { %v56_v18 = vpop.permute.xlu2 %55  }
  0x74   :  { %v8_v19 = vpop.permute.xlu0 %7   ;;  %v20_v20 = vpop.permute.xlu1 %19  }
  0x75   :  { %10 = vst.msk [vmem:[#allocation0] sm:$0x1] %vm9_vm1, %v8_v19   ;;  %v74_v21 = vpop.permute.xlu2 %73  }
  0x7c   :  { %v14_v22 = vpop.permute.xlu0 %13   ;;  %v26_v23 = vpop.permute.xlu1 %25  }
  0x7d   :  { %16 = vst.msk [vmem:[#allocation0] sm:$0x1] %vm15_vm2, %v14_v22   ;;  %v92_v24 = vpop.permute.xlu2 %91  }
  0x7e   :  { %22 = vst.msk [vmem:[#allocation0] sm:$0x1] %vm21_vm3, %v20_v20  }
  0x7f   :  { %28 = vst.msk [vmem:[#allocation0] sm:$0x1] %vm27_vm4, %v26_v23  }
  0x80   :  { %34 = vst.msk [vmem:[#allocation0] sm:$0x1] %vm33_vm5, %v32_v16  }
  0x81   :  { %40 = vst.msk [vmem:[#allocation0] sm:$0x1] %vm39_vm6, %v38_v17  }
  0x84   :  { %v44_v25 = vpop.permute.xlu0 %43   ;;  %v50_v26 = vpop.permute.xlu1 %49  }
  0x85   :  { %46 = vst.msk [vmem:[#allocation0] sm:$0x1] %vm45_vm7, %v44_v25  }
  0x86   :  { %52 = vst.msk [vmem:[#allocation0] sm:$0x1] %vm51_vm8, %v50_v26  }
  0x87   :  { %58 = vst.msk [vmem:[#allocation0] sm:$0x1] %vm57_vm9, %v56_v18  }
  0x8c   :  { %v62_v27 = vpop.permute.xlu0 %61   ;;  %v68_v28 = vpop.permute.xlu1 %67  }
  0x8d   :  { %64 = vst.msk [vmem:[#allocation0] sm:$0x1] %vm63_vm10, %v62_v27  }
  0x8e   :  { %70 = vst.msk [vmem:[#allocation0] sm:$0x1] %vm69_vm11, %v68_v28  }
  0x8f   :  { %76 = vst.msk [vmem:[#allocation0] sm:$0x1] %vm75_vm12, %v74_v21  }
  0x94   :  { %v80_v29 = vpop.permute.xlu0 %79   ;;  %v86_v30 = vpop.permute.xlu1 %85  }
  0x95   :  { %82 = vst.msk [vmem:[#allocation0] sm:$0x1] %vm81_vm13, %v80_v29  }
  0x96   :  { %88 = vst.msk [vmem:[#allocation0] sm:$0x1] %vm87_vm14, %v86_v30  }
  0x97   :  { %94 = vst.msk [vmem:[#allocation0] sm:$0x1] %vm93_vm15, %v92_v24  }
  0x9e   :  { %v97_v31 = vld [vmem:[#allocation0] sm:$0x1] }
  0x9f   :  { %100 = vst [vmem:[%s208_s1] sm:$0x1] %v97_v31 }

// kernel: split_start_block.1
= control target key start
LH: loop header
LB: loop body
LE: loop exit
PB: predicated region body
PF: predicated region fallthrough
CT: control target
= control target key end

     0   :  { %vm51_vm0 = vcmask 523264   ;;  %s348_s30 = smov 32   ;;  %vm324_vm1 = vcmask 261120   ;;  %vm327_vm2 = vcmask 785408   ;;  %s675_s1 = inlined_call_operand.vmem [shape: f32[64,64], index: 1, kind: input, shape index: {}]   ;;  %s676_s3 = inlined_call_operand.vmem [shape: f32[64,256], index: 3, kind: input, shape index: {}]   ;;  %s677_s5 = inlined_call_operand.vmem [shape: f32[64,32], index: 5, kind: input, shape index: {}]   ;;  %s678_s0 = inlined_call_operand.vmem [shape: f32[8,64], index: 0, kind: input, shape index: {}]   ;;  %s679_s9 = inlined_call_operand.vmem [shape: f32[256,32], index: 9, kind: input, shape index: {}]   ;;  %s680_s7 = inlined_call_operand.vmem [shape: f32[64,64], index: 7, kind: input, shape index: {}]   ;;  %s681_s2 = inlined_call_operand.vmem [shape: f32[1,64], index: 2, kind: input, shape index: {}]   ;;  %s682_s8 = inlined_call_operand.vmem [shape: f32[1,64], index: 8, kind: input, shape index: {}]   ;;  %s683_s10 = inlined_call_operand.vmem [shape: f32[64,32], index: 10, kind: input, shape index: {}]   ;;  %s684_s4 = inlined_call_operand.vmem [shape: f32[1,256], index: 4, kind: input, shape index: {}]   ;;  %s685_s6 = inlined_call_operand.vmem [shape: f32[1,32], index: 6, kind: input, shape index: {}]   ;;  %s686_s11 = inlined_call_operand.vmem [shape: f32[8,96], index: 11, kind: output, shape index: {}]  }
   0x1   :  { %v46_v0 = vld [vmem:[%s675_s1 + $0x38] sm:$0xff]  ;;  %v45_v2 = vld [vmem:[%s675_s1 + $0x30] sm:$0xff]  ;;  %v88_v3 = vld [vmem:[%s676_s3 + $0x68] sm:$0xff] }
   0x2   :  { %v90_v1 = vld [vmem:[%s676_s3 + $0x78] sm:$0xff]  ;;  %63 = vmatpush.msra.mxu0 %v46_v0  ;;  %v44_v4 = vld [vmem:[%s675_s1 + $0x28] sm:$0xff]  ;;  %v43_v6 = vld [vmem:[%s675_s1 + $0x20] sm:$0xff] }
   0x3   :  { %125 = vmatpush.msra.mxu2 %v90_v1  ;;  %v86_v5 = vld [vmem:[%s676_s3 + $0x58] sm:$0xff]  ;;  %v84_v7 = vld [vmem:[%s676_s3 + $0x48] sm:$0xff]  ;;  %v89_v8 = vld [vmem:[%s676_s3 + $0x70] sm:$0xff] }
   0x4   :  { %64 = vmatpush.msra.mxu0 %v45_v2  ;;  %v87_v9 = vld [vmem:[%s676_s3 + $0x60] sm:$0xff]  ;;  %v42_v10 = vld [vmem:[%s675_s1 + $0x18] sm:$0xff]  ;;  %105 = vmatpush.msra.mxu1 %v89_v8  ;;  %v85_v12 = vld [vmem:[%s676_s3 + $0x50] sm:$0xff] }
   0x5   :  { %126 = vmatpush.msra.mxu2 %v88_v3  ;;  %v82_v11 = vld [vmem:[%s676_s3 + $0x38] sm:$0xff]  ;;  %v41_v13 = vld [vmem:[%s675_s1 + $0x10] sm:$0xff]  ;;  %v80_v14 = vld [vmem:[%s676_s3 + $0x28] sm:$0xff] }
   0x6   :  { %65 = vmatpush.msra.mxu0 %v44_v4  ;;  %106 = vmatpush.msra.mxu1 %v87_v9  ;;  %v83_v15 = vld [vmem:[%s676_s3 + $0x40] sm:$0xff]  ;;  %v40_v16 = vld [vmem:[%s675_s1 + $0x8] sm:$0xff]  ;;  %v78_v17 = vld [vmem:[%s676_s3 + $0x18] sm:$0xff] }
   0x7   :  { %127 = vmatpush.msra.mxu2 %v86_v5  ;;  %v146_v18 = vld [vmem:[%s677_s5 + $0x38] sm:$0xff]  ;;  %v81_v19 = vld [vmem:[%s676_s3 + $0x30] sm:$0xff]  ;;  %v39_v21 = vld [vmem:[%s675_s1] sm:$0xff] }
   0x8   :  { %66 = vmatpush.msra.mxu0 %v43_v6  ;;  %107 = vmatpush.msra.mxu1 %v85_v12  ;;  %v145_v20 = vld [vmem:[%s677_s5 + $0x30] sm:$0xff]  ;;  %v76_v22 = vld [vmem:[%s676_s3 + $0x8] sm:$0xff]  ;;  %v38_v23 = vld [vmem:[%s678_s0] sm:$0xff] }
   0x9   :  { %128 = vmatpush.msra.mxu2 %v84_v7  ;;  %162 = vmatpush.msra.mxu3 %v146_v18  ;;  %v79_v24 = vld [vmem:[%s676_s3 + $0x20] sm:$0xff]  ;;  %v238_v25 = vld [vmem:[%s679_s9 + $0xf8] sm:$0xff]  ;;  %v144_v27 = vld [vmem:[%s677_s5 + $0x28] sm:$0xff] }
   0xa   :  { %67 = vmatpush.msra.mxu0 %v42_v10  ;;  %108 = vmatpush.msra.mxu1 %v83_v15  ;;  %v181_v26 = vld [vmem:[%s680_s7 + $0x38] sm:$0xff]  ;;  %v77_v28 = vld [vmem:[%s676_s3 + $0x10] sm:$0xff]  ;;  %v143_v31 = vld [vmem:[%s677_s5 + $0x20] sm:$0xff] }
   0xb   :  { %129 = vmatpush.msra.mxu2 %v82_v11  ;;  %163 = vmatpush.msra.mxu3 %v145_v20  ;;  %v237_v29 = vld [vmem:[%s679_s9 + $0xf0] sm:$0xff]  ;;  %v75_v32 = vld [vmem:[%s676_s3] sm:$0xff]  ;;  %v236_v33 = vld [vmem:[%s679_s9 + $0xe8] sm:$0xff] }
   0xc   :  { %68 = vmatpush.msra.mxu0 %v41_v13  ;;  %109 = vmatpush.msra.mxu1 %v81_v19  ;;  %v180_v30 = vld [vmem:[%s680_s7 + $0x30] sm:$0xff]  ;;  %v179_v34 = vld [vmem:[%s680_s7 + $0x28] sm:$0xff]  ;;  %v222_v35 = vld [vmem:[%s679_s9 + $0x78] sm:$0xff] }
   0xd   :  { %130 = vmatpush.msra.mxu2 %v80_v14  ;;  %164 = vmatpush.msra.mxu3 %v144_v27  ;;  %v235_v36 = vld [vmem:[%s679_s9 + $0xe0] sm:$0xff]  ;;  %v142_v38 = vld [vmem:[%s677_s5 + $0x18] sm:$0xff]  ;;  %v221_v39 = vld [vmem:[%s679_s9 + $0x70] sm:$0xff] }
   0xe   :  { %69 = vmatpush.msra.mxu0 %v40_v16  ;;  %110 = vmatpush.msra.mxu1 %v79_v24  ;;  %v178_v37 = vld [vmem:[%s680_s7 + $0x20] sm:$0xff]  ;;  %v234_v40 = vld [vmem:[%s679_s9 + $0xd8] sm:$0xff]  ;;  %v141_v42 = vld [vmem:[%s677_s5 + $0x10] sm:$0xff] }
   0xf   :  { %131 = vmatpush.msra.mxu2 %v78_v17  ;;  %165 = vmatpush.msra.mxu3 %v143_v31  ;;  %v177_v41 = vld [vmem:[%s680_s7 + $0x18] sm:$0xff]  ;;  %v220_v43 = vld [vmem:[%s679_s9 + $0x68] sm:$0xff]  ;;  %v233_v44 = vld [vmem:[%s679_s9 + $0xd0] sm:$0xff] }
  0x10   :  { %70 = vmatpush.msra.mxu0 %v39_v21  ;;  %111 = vmatpush.msra.mxu1 %v77_v28  ;;  %v176_v45 = vld [vmem:[%s680_s7 + $0x10] sm:$0xff]  ;;  %v219_v46 = vld [vmem:[%s679_s9 + $0x60] sm:$0xff]  ;;  %v232_v47 = vld [vmem:[%s679_s9 + $0xc8] sm:$0xff] }
  0x11   :  { %132 = vmatpush.msra.mxu2 %v76_v22  ;;  %333 = vmatmul.msk.f32.vlgmr.msra.gmra.mxu0 %vm51_vm0, %v38_v23  ;;  %v218_v48 = vld [vmem:[%s679_s9 + $0x58] sm:$0xff]  ;;  %v231_v49 = vld [vmem:[%s679_s9 + $0xc0] sm:$0xff]  ;;  %v217_v50 = vld [vmem:[%s679_s9 + $0x50] sm:$0xff] }
  0x12   :  { %335 = vmatmul.msk.f32.vlgmr.msra.gmra.mxu2 %vm51_vm0, %v38_v23  ;;  %194 = vmatpush.msrb.mxu0 %v181_v26  ;;  %v230_v51 = vld [vmem:[%s679_s9 + $0xb8] sm:$0xff]  ;;  %v216_v52 = vld [vmem:[%s679_s9 + $0x48] sm:$0xff]  ;;  %v229_v53 = vld [vmem:[%s679_s9 + $0xb0] sm:$0xff] }
  0x13   :  { %259 = vmatpush.msrb.mxu2 %v238_v25  ;;  %112 = vmatpush.msra.mxu1 %v75_v32  ;;  %v140_v54 = vld [vmem:[%s677_s5 + $0x8] sm:$0xff]  ;;  %v215_v56 = vld [vmem:[%s679_s9 + $0x40] sm:$0xff]  ;;  %v214_v60 = vld [vmem:[%s679_s9 + $0x38] sm:$0xff] }
  0x14   :  { %195 = vmatpush.msrb.mxu0 %v180_v30  ;;  %334 = vmatmul.msk.f32.vlgmr.msra.gmra.mxu1 %vm51_vm0, %v38_v23  ;;  %v175_v55 = vld [vmem:[%s680_s7 + $0x8] sm:$0xff]  ;;  %v139_v58 = vld [vmem:[%s677_s5] sm:$0xff]  ;;  %v213_v62 = vld [vmem:[%s679_s9 + $0x30] sm:$0xff] }
  0x15   :  { %260 = vmatpush.msrb.mxu2 %v237_v29  ;;  %239 = vmatpush.msrb.mxu1 %v222_v35  ;;  %v228_v57 = vld [vmem:[%s679_s9 + $0xa8] sm:$0xff]  ;;  %v174_v59 = vld [vmem:[%s680_s7] sm:$0xff]  ;;  %v226_v63 = vld [vmem:[%s679_s9 + $0x98] sm:$0xff] }
  0x16   :  { %196 = vmatpush.msrb.mxu0 %v179_v34  ;;  %166 = vmatpush.msra.mxu3 %v142_v38  ;;  %v227_v61 = vld [vmem:[%s679_s9 + $0xa0] sm:$0xff]  ;;  %v212_v0 = vld [vmem:[%s679_s9 + $0x28] sm:$0xff]  ;;  %v225_v1 = vld [vmem:[%s679_s9 + $0x90] sm:$0xff] }
  0x17   :  { %261 = vmatpush.msrb.mxu2 %v236_v33  ;;  %240 = vmatpush.msrb.mxu1 %v221_v39  ;;  %v211_v2 = vld [vmem:[%s679_s9 + $0x20] sm:$0xff]  ;;  %v224_v3 = vld [vmem:[%s679_s9 + $0x88] sm:$0xff]  ;;  %v210_v4 = vld [vmem:[%s679_s9 + $0x18] sm:$0xff] }
  0x18   :  { %197 = vmatpush.msrb.mxu0 %v178_v37  ;;  %167 = vmatpush.msra.mxu3 %v141_v42  ;;  %v223_v5 = vld [vmem:[%s679_s9 + $0x80] sm:$0xff]  ;;  %v209_v6 = vld [vmem:[%s679_s9 + $0x10] sm:$0xff]  ;;  %v208_v7 = vld [vmem:[%s679_s9 + $0x8] sm:$0xff] }
  0x19   :  { %262 = vmatpush.msrb.mxu2 %v235_v36  ;;  %241 = vmatpush.msrb.mxu1 %v220_v43  ;;  %v289_v8 = vld [vmem:[%s683_s10 + $0x38] sm:$0xff]  ;;  %v288_v9 = vld [vmem:[%s683_s10 + $0x30] sm:$0xff]  ;;  %v207_v10 = vld [vmem:[%s679_s9] sm:$0xff] }
  0x1a   :  { %198 = vmatpush.msrb.mxu0 %v177_v41  ;;  %168 = vmatpush.msra.mxu3 %v140_v54  ;;  %v287_v11 = vld [vmem:[%s683_s10 + $0x28] sm:$0xff]  ;;  %v286_v12 = vld [vmem:[%s683_s10 + $0x20] sm:$0xff]  ;;  %v285_v13 = vld [vmem:[%s683_s10 + $0x18] sm:$0xff] }
  0x1b   :  { %263 = vmatpush.msrb.mxu2 %v234_v40  ;;  %242 = vmatpush.msrb.mxu1 %v219_v46  ;;  %v341_v14 = vld [vmem:[%s681_s2] ss:$0 sm:$0xff]  ;;  %v284_v26 = vld [vmem:[%s683_s10 + $0x10] sm:$0xff]  ;;  %v283_v27 = vld [vmem:[%s683_s10 + $0x8] sm:$0xff] }
  0x1c   :  { %199 = vmatpush.msrb.mxu0 %v176_v45  ;;  %169 = vmatpush.msra.mxu3 %v139_v58  ;;  %v91_v16 = vld [vmem:[%s684_s4] sm:$0x3] }
  0x1d   :  { %264 = vmatpush.msrb.mxu2 %v233_v44  ;;  %243 = vmatpush.msrb.mxu1 %v218_v48  ;;  %v94_v18 = vperm.slane %v91_v16, 1  ;;  %v93_v19 = vperm.slane %v91_v16, 0  ;;  %v282_v28 = vld [vmem:[%s683_s10] sm:$0xff] }
  0x1e   :  { %200 = vmatpush.msrb.mxu0 %v175_v55  ;;  %301 = vmatpush.msrb.mxu3 %v289_v8  ;;  %v342_v29 = vld [vmem:[%s682_s8] ss:$0 sm:$0xff]  ;;  %s349_s8 = smov 64  }
  0x1f   :  { %265 = vmatpush.msrb.mxu2 %v232_v47  ;;  %244 = vmatpush.msrb.mxu1 %v217_v50  ;;  %v343_v45 = vld [vmem:[%s685_s6] ss:$0 sm:$0xff] }
  0x20   :  { %201 = vmatpush.msrb.mxu0 %v174_v59  ;;  %302 = vmatpush.msrb.mxu3 %v288_v9 }
  0x21   :  { %266 = vmatpush.msrb.mxu2 %v231_v49  ;;  %245 = vmatpush.msrb.mxu1 %v216_v52 }
  0x22   :  { %303 = vmatpush.msrb.mxu3 %v287_v11 }
  0x23   :  { %267 = vmatpush.msrb.mxu2 %v230_v51  ;;  %246 = vmatpush.msrb.mxu1 %v215_v56 }
  0x24   :  { %304 = vmatpush.msrb.mxu3 %v286_v12 }
  0x25   :  { %268 = vmatpush.msrb.mxu2 %v229_v53  ;;  %247 = vmatpush.msrb.mxu1 %v214_v60 }
  0x26   :  { %305 = vmatpush.msrb.mxu3 %v285_v13 }
  0x27   :  { %269 = vmatpush.msrb.mxu2 %v228_v57  ;;  %248 = vmatpush.msrb.mxu1 %v213_v62 }
  0x28   :  { %306 = vmatpush.msrb.mxu3 %v284_v26 }
  0x29   :  { %270 = vmatpush.msrb.mxu2 %v227_v61  ;;  %249 = vmatpush.msrb.mxu1 %v212_v0 }
  0x2a   :  { %307 = vmatpush.msrb.mxu3 %v283_v27 }
  0x2b   :  { %271 = vmatpush.msrb.mxu2 %v226_v63  ;;  %250 = vmatpush.msrb.mxu1 %v211_v2 }
  0x2c   :  { %308 = vmatpush.msrb.mxu3 %v282_v28 }
  0x2d   :  { %272 = vmatpush.msrb.mxu2 %v225_v1  ;;  %251 = vmatpush.msrb.mxu1 %v210_v4 }
  0x2f   :  { %273 = vmatpush.msrb.mxu2 %v224_v3  ;;  %252 = vmatpush.msrb.mxu1 %v209_v6 }
  0x31   :  { %274 = vmatpush.msrb.mxu2 %v223_v5  ;;  %253 = vmatpush.msrb.mxu1 %v208_v7 }
  0x33   :  { %254 = vmatpush.msrb.mxu1 %v207_v10 }
  0x8e   :  { %v72_v15 = vpop.f32.mrf.mxu0 }
  0x8f   :  { %v73_v17 = vadd.f32 %v341_v14, %v72_v15 }
  0x91   :  { %336 = vmatmul.msk.f32.vlgmr.msra.gmra.mxu3 %vm51_vm0, %v73_v17  ;;  %337 = vmatmul.msk.f32.vlgmr.msrb.gmra.mxu0 %vm51_vm0, %v73_v17  ;;  %v114_v21 = vpop.f32.mrf.mxu1 }
  0x92   :  { %v115_v23 = vadd.f32 %v114_v21, %v93_v19 }
  0x94   :  { %v137_v25 = vmul.f32 %v115_v23, %v115_v23 }
  0x95   :  { %v134_v20 = vpop.f32.mrf.mxu2 }
  0x96   :  { %v135_v22 = vadd.f32 %v134_v20, %v94_v18  ;;  %255 = vmatmul.f32.vlgmr.msrb.gmra.mxu1 %v137_v25 }
  0x98   :  { %v138_v24 = vmul.f32 %v135_v22, %v135_v22 }
  0x9a   :  { %275 = vmatmul.f32.vlgmr.msrb.gmra.mxu2 %v138_v24 }
 0x10e   :  { %v203_v30 = vpop.f32.mrf.mxu0 }
 0x10f   :  { %v204_v31 = vadd.f32 %v342_v29, %v203_v30 }
 0x111   :  { %v206_v32 = vmul.f32 %v204_v31, %v204_v31 }
 0x113   :  { %338 = vmatmul.msk.f32.vlgmr.msrb.gmra.mxu3 %vm51_vm0, %v206_v32  ;;  %v256_v33 = vpop.f32.mrf.mxu1 }
 0x114   :  { %v171_v39 = vpop.f32.mrf.mxu3 }
 0x115   :  { %v172_v46 = vadd.f32 %v343_v45, %v171_v39 }
 0x11d   :  { %v276_v34 = vpop.f32.mrf.mxu2 }
 0x11e   :  { %v277_v35 = vadd.f32 %v276_v34, %v256_v33 }
 0x120   :  { %v279_v36 = vmax.f32 %v277_v35, 1e-06 }
 0x122   :  { %344 = vlog2.f32 %v279_v36 }
 0x128   :  { %v345_v37 = vpop.eup %344 }
 0x129   :  { %v281_v38 = vmul.f32 0.6931472, %v345_v37 }
 0x12b   :  { %317 = vrot.lane.b32.xlu0 %v281_v38, %s348_s30 }
 0x196   :  { %v310_v40 = vpop.f32.mrf.mxu3 }
 0x197   :  { %v313_v41 = vmax.f32 %v310_v40, 1e-06 }
 0x199   :  { %346 = vlog2.f32 %v313_v41 }
 0x19d   :  { %v318_v44 = vpop.permute.xlu0 %317 }
 0x19e   :  { %v325_v47 = vsel %vm324_vm1, %v172_v46, %v318_v44 }
 0x19f   :  { %v347_v42 = vpop.eup %346 }
 0x1a0   :  { %v315_v43 = vmul.f32 0.6931472, %v347_v42 }
 0x1a2   :  { %321 = vrot.lane.b32.xlu0 %v315_v43, %s349_s8 }
 0x214   :  { %v322_v48 = vpop.permute.xlu0 %321 }
 0x215   :  { %v326_v49 = vsel %vm51_vm0, %v325_v47, %v322_v48 }
 0x216   :  { %328 = vst.msk [vmem:[%s686_s11] sm:$0xff] %vm327_vm2, %v326_v49 }

</bundles_post_ra>
